<compile_context>
chip_gen: v7x
topology: tpu7x:2x2x1
jax: 0.10.0
libtpu: 0.0.40
codegen_flags: <defaults>
</compile_context>

<pallas_src>
import functools

import jax
import jax.numpy as jnp
from jax.experimental import pallas as pl
from jax.experimental.pallas import tpu as pltpu


def _round_up(n, m):
    return ((n + m - 1) // m) * m


def _mlp_encoder_kernel(xt_ref, w1_ref, w2_ref, w3_ref, wout_ref, out_ref,
                        *, hid, emb, rows_pad):
    """Computes all layer activations for one [in_dim, t_tile] column block.

    Output slab rows: [Y1 | Yf1 | Y2 | Yf2 | Y3 | readout | zero pad]
    (features on sublanes, T on lanes -> every store is lane-dense).
    """
    xt = xt_ref[...]                                                  # [in, t]

    # Layer 1
    y1 = jnp.dot(w1_ref[...], xt, preferred_element_type=jnp.float32)   # [hid, t]
    yf1 = jnp.tanh(y1)
    # Layer 2
    y2 = jnp.dot(w2_ref[...], yf1, preferred_element_type=jnp.float32)  # [hid, t]
    yf2 = jnp.tanh(y2)
    # Layer 3 (final_nonlinearity=False -> identity, Yf3 == Y3)
    y3 = jnp.dot(w3_ref[...], yf2, preferred_element_type=jnp.float32)  # [emb, t]
    # Readout: [1, emb] @ [emb, t] -> [1, t]
    ro = jnp.dot(wout_ref[...], y3, preferred_element_type=jnp.float32)

    out_ref[0:hid, :] = y1
    out_ref[hid:2 * hid, :] = yf1
    out_ref[2 * hid:3 * hid, :] = y2
    out_ref[3 * hid:4 * hid, :] = yf2
    out_ref[4 * hid:4 * hid + emb, :] = y3
    # Readout row + zero pad rows packed into one sublane-aligned store.
    t = ro.shape[1]
    n_pad = rows_pad - (4 * hid + emb) - 1
    tail = jnp.concatenate(
        [ro, jnp.zeros((n_pad, t), jnp.float32)], axis=0)
    out_ref[4 * hid + emb:rows_pad, :] = tail


def mlp_encoder_forward(x, w1, w2, w3, w_out):
    """x: [T, input_dim]; w_i: [out_dim, in_dim]; w_out: [1, embedding_dim].

    Returns (layer_outputs, out) mirroring the PyTorch module:
      layer_outputs[l] = [X_l, Y_l, Yf_l, None, None]   each array [feat, T]
      out: [1, T]
    """
    T, in_dim = x.shape
    hid = w1.shape[0]
    emb = w3.shape[0]

    rows = 4 * hid + emb + 1                 # valid slab rows (=137 here)
    rows_pad = _round_up(rows, 8)            # sublane-aligned (=144 here)

    # T lives on the lane axis now: pad to a multiple of 128, tile over lanes.
    t_lane = _round_up(max(T, 128), 128)
    if t_lane >= 2048:
        t_tile = 1024
    elif t_lane > 128:
        # Keep >= 2 grid steps so v7x's two TensorCores both get work.
        t_tile = _round_up(t_lane // 2, 128)
    else:
        t_tile = 128
    t_pad = _round_up(t_lane, t_tile)

    # One tiny wrapper transpose of x (needed anyway for layer_outputs[0][0]);
    # zero-pad the lane axis (padded columns propagate as exact zeros).
    xt = x.T                                               # [in_dim, T]
    if t_pad != T:
        xt_in = jnp.zeros((in_dim, t_pad), x.dtype).at[:, :T].set(xt)
    else:
        xt_in = xt

    grid = (t_pad // t_tile,)

    kernel = functools.partial(_mlp_encoder_kernel,
                               hid=hid, emb=emb, rows_pad=rows_pad)

    slab = pl.pallas_call(
        kernel,
        out_shape=jax.ShapeDtypeStruct((rows_pad, t_pad), jnp.float32),
        grid_spec=pltpu.PrefetchScalarGridSpec(
            num_scalar_prefetch=0,
            grid=grid,
            in_specs=[
                pl.BlockSpec((in_dim, t_tile), lambda i: (0, i)),   # x.T tile
                pl.BlockSpec(w1.shape, lambda i: (0, 0)),           # resident
                pl.BlockSpec(w2.shape, lambda i: (0, 0)),           # resident
                pl.BlockSpec(w3.shape, lambda i: (0, 0)),           # resident
                pl.BlockSpec(w_out.shape, lambda i: (0, 0)),        # resident
            ],
            out_specs=pl.BlockSpec((rows_pad, t_tile), lambda i: (0, i)),
        ),
        compiler_params=pltpu.CompilerParams(
            dimension_semantics=("parallel",)),
    )(xt_in, w1, w2, w3, w_out)

    # Slab is already [features, T_pad] -> just trim and slice (no transpose).
    y1 = slab[0:hid, :T]
    yf1 = slab[hid:2 * hid, :T]
    y2 = slab[2 * hid:3 * hid, :T]
    yf2 = slab[3 * hid:4 * hid, :T]
    y3 = slab[4 * hid:4 * hid + emb, :T]
    out = slab[4 * hid + emb:4 * hid + emb + 1, :T]        # [1, T]

    layer_outputs = [
        [xt, y1, yf1, None, None],
        [yf1, y2, yf2, None, None],
        [yf2, y3, y3, None, None],   # final_nonlinearity=False: Yf3 == Y3
    ]
    return layer_outputs, out


def _reference_forward(x, w1, w2, w3, w_out):
    xt = x.T
    yf1 = jnp.tanh(w1 @ xt)
    yf2 = jnp.tanh(w2 @ yf1)
    y3 = w3 @ yf2
    return w_out @ y3


if __name__ == "__main__":
    T = 8            # batch size (PyTorch "T")
    input_dim = 16
    hidden_dim = 32
    embedding_dim = 8

    key = jax.random.PRNGKey(0)
    kx, k1, k2, k3, ko = jax.random.split(key, 5)

    x = jax.random.normal(kx, (T, input_dim), dtype=jnp.float32)
    # Deterministic synthetic init (stand-in for init_weights).
    w1 = jax.random.normal(k1, (hidden_dim, input_dim), jnp.float32) / jnp.sqrt(input_dim)
    w2 = jax.random.normal(k2, (hidden_dim, hidden_dim), jnp.float32) / jnp.sqrt(hidden_dim)
    w3 = jax.random.normal(k3, (embedding_dim, hidden_dim), jnp.float32) / jnp.sqrt(hidden_dim)
    w_out = jax.random.normal(ko, (1, embedding_dim), jnp.float32) / jnp.sqrt(embedding_dim)

    layer_outputs, out = mlp_encoder_forward(x, w1, w2, w3, w_out)
    out = jax.block_until_ready(out)

    ref = _reference_forward(x, w1, w2, w3, w_out)
    assert out.shape == (1, T)
    assert jnp.allclose(out, ref, atol=1e-5, rtol=1e-5)
    assert jnp.allclose(layer_outputs[0][2],
                        jnp.tanh(w1 @ x.T), atol=1e-5, rtol=1e-5)
    assert jnp.allclose(layer_outputs[1][1],
                        w2 @ jnp.tanh(w1 @ x.T), atol=1e-5, rtol=1e-5)
    assert jnp.allclose(layer_outputs[2][2],
                        w3 @ jnp.tanh(w2 @ jnp.tanh(w1 @ x.T)),
                        atol=1e-5, rtol=1e-5)

    # Exercise the multi-step grid + lane-padding path (non-aligned T).
    T2 = 272
    x2 = jax.random.normal(jax.random.PRNGKey(1), (T2, input_dim), jnp.float32)
    lo2, out2 = mlp_encoder_forward(x2, w1, w2, w3, w_out)
    out2 = jax.block_until_ready(out2)
    ref2 = _reference_forward(x2, w1, w2, w3, w_out)
    assert out2.shape == (1, T2)
    assert jnp.allclose(out2, ref2, atol=1e-5, rtol=1e-5)
    assert jnp.allclose(lo2[0][2], jnp.tanh(w1 @ x2.T), atol=1e-5, rtol=1e-5)
    assert jnp.allclose(lo2[2][1], w3 @ jnp.tanh(w2 @ jnp.tanh(w1 @ x2.T)),
                        atol=1e-5, rtol=1e-5)

    # Larger T: 1024-lane tiles, multi-step grid.
    T3 = 2300
    x3 = jax.random.normal(jax.random.PRNGKey(2), (T3, input_dim), jnp.float32)
    _, out3 = mlp_encoder_forward(x3, w1, w2, w3, w_out)
    out3 = jax.block_until_ready(out3)
    ref3 = _reference_forward(x3, w1, w2, w3, w_out)
    assert out3.shape == (1, T3)
    assert jnp.allclose(out3, ref3, atol=1e-5, rtol=1e-5)

    print("KERNEL_OK")
</pallas_src>

<mosaic_0001>
module attributes {stable_mosaic.version = 11 : i64} {
  func.func @_mlp_encoder_kernel(%arg0: i32, %arg1: memref<16x128xf32, #tpu.memory_space<vmem>>, %arg2: memref<32x16xf32, #tpu.memory_space<vmem>>, %arg3: memref<32x32xf32, #tpu.memory_space<vmem>>, %arg4: memref<8x32xf32, #tpu.memory_space<vmem>>, %arg5: memref<1x8xf32, #tpu.memory_space<vmem>>, %arg6: memref<144x128xf32, #tpu.memory_space<vmem>>) attributes {dimension_semantics = [#tpu.dimension_semantics<parallel>], iteration_bounds = array<i64: 1>, scalar_prefetch = 0 : i64, scratch_operands = 0 : i64, tpu.core_type = #tpu.core_type<tc>, window_params = [{transform_indices = @transform_0, window_bounds = array<i64: 16, 128>}, {pipeline_mode = #tpu.pipeline_mode<synchronous>, transform_indices = @transform_1, window_bounds = array<i64: 32, 16>}, {pipeline_mode = #tpu.pipeline_mode<synchronous>, transform_indices = @transform_2, window_bounds = array<i64: 32, 32>}, {pipeline_mode = #tpu.pipeline_mode<synchronous>, transform_indices = @transform_3, window_bounds = array<i64: 8, 32>}, {pipeline_mode = #tpu.pipeline_mode<synchronous>, transform_indices = @transform_4, window_bounds = array<i64: 1, 8>}, {transform_indices = @transform_5, window_bounds = array<i64: 144, 128>}]} {
    %c0 = arith.constant 0 : index
    %c0_0 = arith.constant 0 : index
    %0 = vector.load %arg1[%c0, %c0_0] : memref<16x128xf32, #tpu.memory_space<vmem>>, vector<16x128xf32>
    %c0_1 = arith.constant 0 : index
    %c0_2 = arith.constant 0 : index
    %1 = vector.load %arg2[%c0_1, %c0_2] : memref<32x16xf32, #tpu.memory_space<vmem>>, vector<32x16xf32>
    %cst = arith.constant dense<0.000000e+00> : vector<32x128xf32>
    %2 = tpu.matmul %1, %0, %cst {dimension_numbers = #tpu.dot_dimension_numbers<[1], [0], [0], [1], [0, 0, 1, 1], [], []>} : vector<32x16xf32>, vector<16x128xf32>, vector<32x128xf32> -> vector<32x128xf32>
    %3 = math.tanh %2 : vector<32x128xf32>
    %c0_3 = arith.constant 0 : index
    %c0_4 = arith.constant 0 : index
    %4 = vector.load %arg3[%c0_3, %c0_4] : memref<32x32xf32, #tpu.memory_space<vmem>>, vector<32x32xf32>
    %cst_5 = arith.constant dense<0.000000e+00> : vector<32x128xf32>
    %5 = tpu.matmul %4, %3, %cst_5 {dimension_numbers = #tpu.dot_dimension_numbers<[1], [0], [0], [1], [0, 0, 1, 1], [], []>} : vector<32x32xf32>, vector<32x128xf32>, vector<32x128xf32> -> vector<32x128xf32>
    %6 = math.tanh %5 : vector<32x128xf32>
    %c0_6 = arith.constant 0 : index
    %c0_7 = arith.constant 0 : index
    %7 = vector.load %arg4[%c0_6, %c0_7] : memref<8x32xf32, #tpu.memory_space<vmem>>, vector<8x32xf32>
    %cst_8 = arith.constant dense<0.000000e+00> : vector<8x128xf32>
    %8 = tpu.matmul %7, %6, %cst_8 {dimension_numbers = #tpu.dot_dimension_numbers<[1], [0], [0], [1], [0, 0, 1, 1], [], []>} : vector<8x32xf32>, vector<32x128xf32>, vector<8x128xf32> -> vector<8x128xf32>
    %c0_9 = arith.constant 0 : index
    %c0_10 = arith.constant 0 : index
    %9 = vector.load %arg5[%c0_9, %c0_10] : memref<1x8xf32, #tpu.memory_space<vmem>>, vector<1x8xf32>
    %cst_11 = arith.constant dense<0.000000e+00> : vector<1x128xf32>
    %10 = tpu.matmul %9, %8, %cst_11 {dimension_numbers = #tpu.dot_dimension_numbers<[1], [0], [0], [1], [0, 0, 1, 1], [], []>} : vector<1x8xf32>, vector<8x128xf32>, vector<1x128xf32> -> vector<1x128xf32>
    %c0_12 = arith.constant 0 : index
    %c0_13 = arith.constant 0 : index
    %11 = vector.load %arg6[%c0_12, %c0_13] : memref<144x128xf32, #tpu.memory_space<vmem>>, vector<32x128xf32>
    tpu.vector_store %arg6[%c0_12, %c0_13], %2 {strides = array<i32>} : memref<144x128xf32, #tpu.memory_space<vmem>>, vector<32x128xf32>,
    %c32 = arith.constant 32 : index
    %c0_14 = arith.constant 0 : index
    %12 = vector.load %arg6[%c32, %c0_14] : memref<144x128xf32, #tpu.memory_space<vmem>>, vector<32x128xf32>
    tpu.vector_store %arg6[%c32, %c0_14], %3 {strides = array<i32>} : memref<144x128xf32, #tpu.memory_space<vmem>>, vector<32x128xf32>,
    %c64 = arith.constant 64 : index
    %c0_15 = arith.constant 0 : index
    %13 = vector.load %arg6[%c64, %c0_15] : memref<144x128xf32, #tpu.memory_space<vmem>>, vector<32x128xf32>
    tpu.vector_store %arg6[%c64, %c0_15], %5 {strides = array<i32>} : memref<144x128xf32, #tpu.memory_space<vmem>>, vector<32x128xf32>,
    %c96 = arith.constant 96 : index
    %c0_16 = arith.constant 0 : index
    %14 = vector.load %arg6[%c96, %c0_16] : memref<144x128xf32, #tpu.memory_space<vmem>>, vector<32x128xf32>
    tpu.vector_store %arg6[%c96, %c0_16], %6 {strides = array<i32>} : memref<144x128xf32, #tpu.memory_space<vmem>>, vector<32x128xf32>,
    %c128 = arith.constant 128 : index
    %c0_17 = arith.constant 0 : index
    %15 = vector.load %arg6[%c128, %c0_17] : memref<144x128xf32, #tpu.memory_space<vmem>>, vector<8x128xf32>
    tpu.vector_store %arg6[%c128, %c0_17], %8 {strides = array<i32>} : memref<144x128xf32, #tpu.memory_space<vmem>>, vector<8x128xf32>,
    %cst_18 = arith.constant 0.000000e+00 : f32
    %16 = vector.broadcast %cst_18 : f32 to vector<7x128xf32>
    %17 = tpu.concatenate %10, %16 in 0 : vector<1x128xf32>, vector<7x128xf32> -> vector<8x128xf32>
    %c136 = arith.constant 136 : index
    %c0_19 = arith.constant 0 : index
    %18 = vector.load %arg6[%c136, %c0_19] : memref<144x128xf32, #tpu.memory_space<vmem>>, vector<8x128xf32>
    tpu.vector_store %arg6[%c136, %c0_19], %17 {strides = array<i32>} : memref<144x128xf32, #tpu.memory_space<vmem>>, vector<8x128xf32>,
    return
  }
  func.func @transform_0(%arg0: i32) -> (i32, i32) {
    %c0_i32 = arith.constant 0 : i32
    %c0_i32_0 = arith.constant 0 : i32
    return %c0_i32, %arg0 : i32, i32
  }
  func.func @transform_1(%arg0: i32) -> (i32, i32) {
    %c0_i32 = arith.constant 0 : i32
    %c0_i32_0 = arith.constant 0 : i32
    %c0_i32_1 = arith.constant 0 : i32
    return %c0_i32, %c0_i32_0 : i32, i32
  }
  func.func @transform_2(%arg0: i32) -> (i32, i32) {
    %c0_i32 = arith.constant 0 : i32
    %c0_i32_0 = arith.constant 0 : i32
    %c0_i32_1 = arith.constant 0 : i32
    return %c0_i32, %c0_i32_0 : i32, i32
  }
  func.func @transform_3(%arg0: i32) -> (i32, i32) {
    %c0_i32 = arith.constant 0 : i32
    %c0_i32_0 = arith.constant 0 : i32
    %c0_i32_1 = arith.constant 0 : i32
    return %c0_i32, %c0_i32_0 : i32, i32
  }
  func.func @transform_4(%arg0: i32) -> (i32, i32) {
    %c0_i32 = arith.constant 0 : i32
    %c0_i32_0 = arith.constant 0 : i32
    %c0_i32_1 = arith.constant 0 : i32
    return %c0_i32, %c0_i32_0 : i32, i32
  }
  func.func @transform_5(%arg0: i32) -> (i32, i32) {
    %c0_i32 = arith.constant 0 : i32
    %c0_i32_0 = arith.constant 0 : i32
    return %c0_i32, %arg0 : i32, i32
  }
}

</mosaic_0001>

<bundles_post_ra>
// kernel: tpu_custom_call.1
= control target key start
LH: loop header
LB: loop body
LE: loop exit
PB: predicated region body
PF: predicated region fallthrough
CT: control target
= control target key end

     0   :  { %vm27_vm0 = vcmask 130048   ;;  %s646_s0 = inlined_call_operand.vmem [shape: f32[16,128], index: 0, kind: input, shape index: {}]   ;;  %s647_s1 = inlined_call_operand.vmem [shape: f32[32,16], index: 1, kind: input, shape index: {}]   ;;  %s648_s2 = inlined_call_operand.vmem [shape: f32[32,32], index: 2, kind: input, shape index: {}]   ;;  %s649_s3 = inlined_call_operand.vmem [shape: f32[8,32], index: 3, kind: input, shape index: {}]   ;;  %s650_s4 = inlined_call_operand.vmem [shape: f32[1,8], index: 4, kind: input, shape index: {}]   ;;  %s651_s5 = inlined_call_operand.hbm [shape: f32[144,128], index: 5, kind: output, shape index: {}]  }
   0x1   :  { %v21_v0 = vld [vmem:[%s646_s0] sm:$0xff]  ;;  %v22_v1 = vld [vmem:[%s646_s0 + $0x8] sm:$0xff] }
   0x2   :  { %v23_v2 = vld [vmem:[%s647_s1] sm:$0xff]  ;;  %v491_v3 = vpack.c.bf16 %v22_v1, %v21_v0 }
   0x3   :  { %455 = vmatprep.mubr.msk.f32.mxu0 %vm27_vm0, %v23_v2 }
   0x4   :  { %10 = vsyncpa [#allocation3], 0  ;;  %492 = vmatprep.subr.bf16.mxu0 %v491_v3  ;;  %v24_v4 = vld [vmem:[%s647_s1 + $0x8] sm:$0xff]  ;;  %v25_v5 = vld [vmem:[%s647_s1 + $0x10] sm:$0xff]  ;;  %vm133_vm1 = vcmask 261120   ;;  %v555_v21 = vmov 0.0|0.0  }
   0x5   :  { %494 = vmatpush3.bf16.msra.mxu0 %v491_v3  ;;  %v26_v6 = vld [vmem:[%s647_s1 + $0x18] sm:$0xff]  ;;  %v129_v7 = vld [vmem:[%s648_s2] sm:$0xff]  ;;  %v130_v18 = vld [vmem:[%s648_s2 + $0x8] sm:$0xff]  ;;  %vm556_vm2 = vmmov 0   ;;  %v557_v22 = vmov 0.0   ;;  %vm310_vm3 = vcmask 64512  }
   0x6   :  { %469 = vmatprep.mubr.msk.f32.mxu1 %vm133_vm1, %v129_v7  ;;  %v131_v19 = vld [vmem:[%s648_s2 + $0x10] sm:$0xff]  ;;  %v132_v20 = vld [vmem:[%s648_s2 + $0x18] sm:$0xff]  ;;  %503 = vmatprep.subr.bf16.mxu0 %v555_v21  ;;  %v235_v33 = vld [vmem:[%s649_s3] sm:$0xff]  ;;  %s558_s14 = smov [#allocation2]   ;;  %vm401_vm4 = vcmask 1040384  }
   0x7   :  { %v309_v34 = vld [vmem:[%s650_s4] sm:$0x1]  ;;  %s409_s15 = sshll.u32 %s558_s14, 4  ;;  %s410_s15 = int_to_ptr.vmem [resolvable:$true] %s409_s15 }
   0x8   :  { %456 = vmatmul.mubr.msk.f32.vlgmr.msra.gmra.mrb[0].mxu0 %vm27_vm0, %v24_v4  ;;  %s531_s3 = scalar_lea.vmem %s410_s15, 2304  ;;  %p536_p1 = scmp.lt.s32.totalorder %s410_s15, %s410_s15 }
   0x9   :  { %458 = vmatprep.mubr.msk.f32.mxu0 %vm27_vm0, %v25_v5  ;;  %p532_p0 = scmp.ne.s32.totalorder %s410_s15, %s531_s3  ;;  %p537_p2 = scmp.lt.s32.totalorder %s531_s3, %s531_s3 }
   0xb   :  { %p538_p3 = por %p537_p2, %p536_p1 }
   0xc   :  { %459 = vmatmul.mubr.msk.f32.gmra.mrb[2].mxu0 %vm27_vm0, %v26_v6 }
   0xd   :  { %483 = vmatprep.mubr.msk.f32.mxu0 %vm556_vm2, %v557_v22  ;;  %p539_p4 = pnand %p538_p3, %p532_p0 }
  0xdb   :  { %v457_v8 = vpop.f32.mrb[0].mxu0 }
  0xdc   :  { %515 = vtanh.f32 %v457_v8  ;;  %385 = vst [vmem:[#allocation2 + $0x8] sm:$0xff] %v457_v8  ;;  %v106_v9 = vpop.f32.mrb[1].mxu0 }
  0xdd   :  { %517 = vtanh.f32 %v106_v9  ;;  %384 = vst [vmem:[#allocation2] sm:$0xff] %v106_v9 }
  0xdf   :  { %v460_v10 = vpop.f32.mrb[2].mxu0 }
  0xe0   :  { %519 = vtanh.f32 %v460_v10  ;;  %387 = vst [vmem:[#allocation2 + $0x18] sm:$0xff] %v460_v10  ;;  %v116_v11 = vpop.f32.mrb[3].mxu0 }
  0xe1   :  { %521 = vtanh.f32 %v116_v11  ;;  %386 = vst [vmem:[#allocation2 + $0x10] sm:$0xff] %v116_v11 }
  0xe6   :  { %v516_v12 = vpop.eup %515 }
  0xe7   :  { %v518_v13 = vpop.eup %517  ;;  %389 = vst [vmem:[#allocation2 + $0x28] sm:$0xff] %v516_v12 }
  0xe8   :  { %388 = vst [vmem:[#allocation2 + $0x20] sm:$0xff] %v518_v13  ;;  %v495_v14 = vpack.c.bf16 %v516_v12, %v518_v13 }
  0xea   :  { %v520_v15 = vpop.eup %519  ;;  %496 = vmatprep.subr.bf16.mxu1 %v495_v14 }
  0xeb   :  { %v522_v16 = vpop.eup %521  ;;  %391 = vst [vmem:[#allocation2 + $0x38] sm:$0xff] %v520_v15  ;;  %498 = vmatpush3.bf16.msra.mxu1 %v495_v14 }
  0xec   :  { %390 = vst [vmem:[#allocation2 + $0x30] sm:$0xff] %v522_v16  ;;  %v499_v17 = vpack.c.bf16 %v520_v15, %v522_v16 }
  0xee   :  { %500 = vmatprep.subr.bf16.mxu1 %v499_v17 }
  0xef   :  { %502 = vmatpush3.bf16.msra.mxu1 %v499_v17 }
  0xf2   :  { %470 = vmatmul.mubr.msk.f32.vlgmr.msra.gmra.mrb[0].mxu1 %vm133_vm1, %v130_v18 }
  0xf3   :  { %472 = vmatprep.mubr.msk.f32.mxu1 %vm133_vm1, %v131_v19 }
  0xf6   :  { %473 = vmatmul.mubr.msk.f32.gmra.mrb[2].mxu1 %vm133_vm1, %v132_v20 }
 0x1c5   :  { %v471_v23 = vpop.f32.mrb[0].mxu1 }
 0x1c6   :  { %523 = vtanh.f32 %v471_v23  ;;  %393 = vst [vmem:[#allocation2 + $0x48] sm:$0xff] %v471_v23  ;;  %v212_v24 = vpop.f32.mrb[1].mxu1 }
 0x1c7   :  { %525 = vtanh.f32 %v212_v24  ;;  %392 = vst [vmem:[#allocation2 + $0x40] sm:$0xff] %v212_v24 }
 0x1c9   :  { %v474_v25 = vpop.f32.mrb[2].mxu1 }
 0x1ca   :  { %527 = vtanh.f32 %v474_v25  ;;  %395 = vst [vmem:[#allocation2 + $0x58] sm:$0xff] %v474_v25  ;;  %v222_v26 = vpop.f32.mrb[3].mxu1 }
 0x1cb   :  { %529 = vtanh.f32 %v222_v26  ;;  %394 = vst [vmem:[#allocation2 + $0x50] sm:$0xff] %v222_v26 }
 0x1d0   :  { %v524_v27 = vpop.eup %523 }
 0x1d1   :  { %v526_v28 = vpop.eup %525  ;;  %397 = vst [vmem:[#allocation2 + $0x68] sm:$0xff] %v524_v27 }
 0x1d2   :  { %396 = vst [vmem:[#allocation2 + $0x60] sm:$0xff] %v526_v28  ;;  %v504_v29 = vpack.c.bf16 %v524_v27, %v526_v28 }
 0x1d4   :  { %v528_v30 = vpop.eup %527  ;;  %505 = vmatpush3.bf16.msra.mxu0 %v504_v29 }
 0x1d5   :  { %v530_v31 = vpop.eup %529  ;;  %399 = vst [vmem:[#allocation2 + $0x78] sm:$0xff] %v528_v30  ;;  %506 = vmatprep.subr.bf16.mxu0 %v555_v21 }
 0x1d6   :  { %398 = vst [vmem:[#allocation2 + $0x70] sm:$0xff] %v530_v31  ;;  %v507_v32 = vpack.c.bf16 %v528_v30, %v530_v31 }
 0x1d8   :  { %508 = vmatpush3.bf16.msra.mxu0 %v507_v32 }
 0x1d9   :  { %486 = vmatprep.subr.mxu0 %v557_v22 }
 0x1db   :  { %484 = vmatmul.mubr.msk.f32.vlgmr.msra.gmra.mrb[4].mxu0 %vm133_vm1, %v235_v33 }
 0x1dc   :  { %488 = vmatprep.mubr.msk.f32.mxu0 %vm556_vm2, %v557_v22 }
 0x2ae   :  { %v305_v35 = vpop.f32.mrb[4].mxu0 }
 0x2af   :  { %400 = vst [vmem:[#allocation2 + $0x80] sm:$0xff] %v305_v35  ;;  %v485_v36 = vpop.f32.mrb[5].mxu0  ;;  %487 = vmatpush3.msra.mxu0 %v305_v35 }
 0x2b0   :  { %489 = vmatmul.mubr.msk.f32.vlgmr.msra.gmra.mrb[6].mxu0 %vm310_vm3, %v309_v34 }
 0x383   :  { %v380_v37 = vpop.f32.mrb[6].mxu0 }
 0x384   :  { %v402_v38 = vsel %vm401_vm4, %v380_v37, 0.0  ;;  %v490_v39 = vpop.f32.mrb[7].mxu0 }
 0x385   :  { %403 = vst [vmem:[#allocation2 + $0x88] sm:$0xff] %v402_v38 }
 0x386   :  { %542 = shalt.err (!%p539_p4)
}
 0x387   :  { %s543_s17 = scalar_lea.hbm %s651_s5, 2304 }
 0x388   :  { %p544_p5 = scmp.ne.s32.totalorder %s651_s5, %s543_s17  ;;  %p547_p6 = scmp.lt.u32.totalorder %s543_s17, %s651_s5 }
 0x38a   :  { %p549_p7 = pnand %p547_p6, %p544_p5 }
 0x38c   :  { %552 = shalt.err (!%p549_p7)
}
 0x38d   :  { %s559_s22 = smov 128   ;;  %s560_s23 = smov 8  }
 0x38e   :  { %415 = dma.vmem_to_hbm [thread:$0]  %s410_s15, 2304, %s651_s5, [#allocation3], %s559_s22, %s559_s22, %s560_s23  }
 0x38f   :  { %553 = dma.done.wait [#allocation3], 2304  }
 0x390   :  { %554 = vsyncadd [#allocation3], 4294964992 }
 0x391   :  { %419 = vsyncpa [#allocation3], 1 }

</bundles_post_ra>
